<compile_context>
chip_gen: v5e
topology: v5e:2x2
jax: 0.10.0
libtpu: 0.0.40
codegen_flags: <defaults>
</compile_context>

<pallas_src>
import jax
import jax.numpy as jnp
from jax.experimental import pallas as pl
from jax.experimental.pallas import tpu as pltpu


# ----------------------------------------------------------------------------
# Kernel body: fused 1x1 conv + bias + tanh + residual subtract
# ----------------------------------------------------------------------------
def _make_fog_kernel(c, nb, use_vpu):
    def kernel(x_ref, w_ref, b_ref, o_ref):
        # x_ref/o_ref: (nb, c, t) pixels-last (lane-dense) slab
        # w_ref:       (c, c)     1x1 conv weight (out_ch, in_ch), resident
        # b_ref:       (c, 1)     conv bias, resident
        w = w_ref[...]
        b = b_ref[...]
        for bi in range(nb):
            x = x_ref[bi]                                      # (c, t)
            if use_vpu:
                # Tiny channel count: unrolled broadcast-FMA on the VPU
                # instead of a <1%-utilized MXU matmul.
                acc = w[:, 0:1] * x[0:1, :]
                for ci in range(1, c):
                    acc = acc + w[:, ci:ci + 1] * x[ci:ci + 1, :]
            else:
                acc = jnp.dot(w, x, preferred_element_type=jnp.float32)
            fog = jnp.tanh(acc + b)
            o_ref[bi] = (x - fog).astype(o_ref.dtype)

    return kernel


# ----------------------------------------------------------------------------
# Tiling: lane-aligned pixel tiles sized for ~4 MiB/buffer, padded pixel axis,
# and batch blocking for small images (keeping >=2 grid points when possible).
# ----------------------------------------------------------------------------
def _choose_tiling(n, c, hw, itemsize, budget_bytes=4 * 1024 * 1024):
    # Largest lane-aligned pixel tile such that one (c, t) buffer <= budget.
    max_t = max(128, (budget_bytes // (c * itemsize)) // 128 * 128)
    hw128 = pl.cdiv(hw, 128) * 128          # pixel axis padded to lane multiple
    k = pl.cdiv(hw128, max_t)               # number of pixel tiles
    t = pl.cdiv(hw128 // 128, k) * 128      # evenly split, multiple of 128
    hw_pad = k * t

    # Batch blocking: pack images per step while staying under budget and
    # keeping at least 2 grid points (megacore) whenever the problem allows.
    slab_bytes = c * t * itemsize
    nb = 1
    for cand in range(1, n + 1):
        if n % cand:
            continue
        if cand * slab_bytes > budget_bytes:
            break
        if (n // cand) * k >= 2 or n * k == 1:
            nb = cand
    return t, k, hw_pad, nb


# ----------------------------------------------------------------------------
# Forward wrapper (NCHW in / NCHW out, matching the PyTorch module)
# ----------------------------------------------------------------------------
@jax.jit
def fog_suppression_forward(x_nchw, params):
    n, c, h, w_sp = x_nchw.shape
    hw = h * w_sp
    itemsize = jnp.dtype(x_nchw.dtype).itemsize
    t, k, hw_pad, nb = _choose_tiling(n, c, hw, itemsize)

    x2 = x_nchw.reshape(n, c, hw)            # free reshape; pixels stay last
    if hw_pad != hw:
        # Pad the pixel axis so every tile is full and lane-dense; padded
        # columns produce garbage that is sliced off below.
        x2 = jnp.pad(x2, ((0, 0), (0, 0), (0, hw_pad - hw)))
    w2 = params["w"].reshape(c, c).astype(jnp.float32)   # (Cout,Cin,1,1)->(Cout,Cin)
    b2 = params["b"].reshape(c, 1).astype(jnp.float32)

    kernel = _make_fog_kernel(c, nb, use_vpu=(c <= 8))

    cost = pl.CostEstimate(
        flops=2 * n * c * c * hw + 2 * n * c * hw,
        transcendentals=n * c * hw,
        bytes_accessed=2 * n * c * hw * itemsize + (c * c + c) * 4,
    )

    out = pl.pallas_call(
        kernel,
        out_shape=jax.ShapeDtypeStruct((n, c, hw_pad), x_nchw.dtype),
        grid=(n // nb, k),
        in_specs=[
            pl.BlockSpec((nb, c, t), lambda i, j: (i, 0, j)),   # input tile
            pl.BlockSpec((c, c), lambda i, j: (0, 0)),          # weight (resident)
            pl.BlockSpec((c, 1), lambda i, j: (0, 0)),          # bias   (resident)
        ],
        out_specs=pl.BlockSpec((nb, c, t), lambda i, j: (i, 0, j)),
        compiler_params=pltpu.CompilerParams(
            dimension_semantics=("parallel", "parallel"),
            vmem_limit_bytes=32 * 1024 * 1024,
        ),
        cost_estimate=cost,
    )(x2, w2, b2)

    if hw_pad != hw:
        out = out[:, :, :hw]
    return out.reshape(n, c, h, w_sp)


# ----------------------------------------------------------------------------
# Parameters (deterministic; matches nn.Conv2d(channels, channels, 1) init)
# ----------------------------------------------------------------------------
def init_params(key, channels):
    k1, k2 = jax.random.split(key)
    bound = 1.0 / jnp.sqrt(channels)  # fan_in = channels * 1 * 1
    w = jax.random.uniform(k1, (channels, channels, 1, 1), jnp.float32, -bound, bound)
    b = jax.random.uniform(k2, (channels,), jnp.float32, -bound, bound)
    return dict(w=w, b=b)


# ----------------------------------------------------------------------------
# Pure-JAX reference for correctness check
# ----------------------------------------------------------------------------
def reference_forward(x_nchw, params):
    c = params["w"].shape[0]
    w2 = params["w"].reshape(c, c)
    fog = jnp.einsum("oc,nchw->nohw", w2, x_nchw,
                     precision=jax.lax.Precision.HIGHEST)
    fog = jnp.tanh(fog + params["b"].reshape(1, c, 1, 1))
    return x_nchw - fog


if __name__ == "__main__":
    key = jax.random.PRNGKey(0)
    kx, kp = jax.random.split(key)

    batch, channels, spatial = 2, 4, 16
    x = jax.random.normal(kx, (batch, channels, spatial, spatial), jnp.float32)
    params = init_params(kp, channels)

    out = fog_suppression_forward(x, params)
    out = jax.block_until_ready(out)
    assert out.shape == (batch, channels, spatial, spatial), out.shape

    ref = reference_forward(x, params)
    max_err = float(jnp.max(jnp.abs(out - ref)))
    assert jnp.allclose(out, ref, atol=1e-4, rtol=1e-4), max_err

    print("KERNEL_OK")
</pallas_src>

<mosaic_0001>
module attributes {stable_mosaic.version = 11 : i64} {
  func.func @kernel(%arg0: i32, %arg1: i32, %arg2: memref<1x4x256xf32, #tpu.memory_space<vmem>>, %arg3: memref<4x4xf32, #tpu.memory_space<vmem>>, %arg4: memref<4x1xf32, #tpu.memory_space<vmem>>, %arg5: memref<1x4x256xf32, #tpu.memory_space<vmem>>) attributes {dimension_semantics = [#tpu.dimension_semantics<parallel>, #tpu.dimension_semantics<parallel>], iteration_bounds = array<i64: 2, 1>, scalar_prefetch = 0 : i64, scratch_operands = 0 : i64, tpu.core_type = #tpu.core_type<tc>, window_params = [{transform_indices = @transform_0, window_bounds = array<i64: 1, 4, 256>}, {pipeline_mode = #tpu.pipeline_mode<synchronous>, transform_indices = @transform_1, window_bounds = array<i64: 4, 4>}, {pipeline_mode = #tpu.pipeline_mode<synchronous>, transform_indices = @transform_2, window_bounds = array<i64: 4, 1>}, {transform_indices = @transform_3, window_bounds = array<i64: 1, 4, 256>}]} {
    %c0 = arith.constant 0 : index
    %c0_0 = arith.constant 0 : index
    %0 = vector.load %arg3[%c0, %c0_0] : memref<4x4xf32, #tpu.memory_space<vmem>>, vector<4x4xf32>
    %c0_1 = arith.constant 0 : index
    %c0_2 = arith.constant 0 : index
    %1 = vector.load %arg4[%c0_1, %c0_2] : memref<4x1xf32, #tpu.memory_space<vmem>>, vector<4x1xf32>
    %c0_3 = arith.constant 0 : index
    %c0_4 = arith.constant 0 : index
    %c0_5 = arith.constant 0 : index
    %2 = vector.load %arg2[%c0_3, %c0_4, %c0_5] : memref<1x4x256xf32, #tpu.memory_space<vmem>>, vector<1x4x256xf32>
    %3 = vector.shape_cast %2 : vector<1x4x256xf32> to vector<4x256xf32>
    %4 = vector.extract_strided_slice %0 {offsets = [0, 0], sizes = [4, 1], strides = [1, 1]} : vector<4x4xf32> to vector<4x1xf32>
    %5 = vector.extract_strided_slice %3 {offsets = [0, 0], sizes = [1, 256], strides = [1, 1]} : vector<4x256xf32> to vector<1x256xf32>
    %6 = vector.broadcast %4 : vector<4x1xf32> to vector<4x256xf32>
    %7 = vector.broadcast %5 : vector<1x256xf32> to vector<4x256xf32>
    %8 = arith.mulf %6, %7 : vector<4x256xf32>
    %9 = vector.extract_strided_slice %0 {offsets = [0, 1], sizes = [4, 1], strides = [1, 1]} : vector<4x4xf32> to vector<4x1xf32>
    %10 = vector.extract_strided_slice %3 {offsets = [1, 0], sizes = [1, 256], strides = [1, 1]} : vector<4x256xf32> to vector<1x256xf32>
    %11 = vector.broadcast %9 : vector<4x1xf32> to vector<4x256xf32>
    %12 = vector.broadcast %10 : vector<1x256xf32> to vector<4x256xf32>
    %13 = arith.mulf %11, %12 : vector<4x256xf32>
    %14 = arith.addf %8, %13 : vector<4x256xf32>
    %15 = vector.extract_strided_slice %0 {offsets = [0, 2], sizes = [4, 1], strides = [1, 1]} : vector<4x4xf32> to vector<4x1xf32>
    %16 = vector.extract_strided_slice %3 {offsets = [2, 0], sizes = [1, 256], strides = [1, 1]} : vector<4x256xf32> to vector<1x256xf32>
    %17 = vector.broadcast %15 : vector<4x1xf32> to vector<4x256xf32>
    %18 = vector.broadcast %16 : vector<1x256xf32> to vector<4x256xf32>
    %19 = arith.mulf %17, %18 : vector<4x256xf32>
    %20 = arith.addf %14, %19 : vector<4x256xf32>
    %21 = vector.extract_strided_slice %0 {offsets = [0, 3], sizes = [4, 1], strides = [1, 1]} : vector<4x4xf32> to vector<4x1xf32>
    %22 = vector.extract_strided_slice %3 {offsets = [3, 0], sizes = [1, 256], strides = [1, 1]} : vector<4x256xf32> to vector<1x256xf32>
    %23 = vector.broadcast %21 : vector<4x1xf32> to vector<4x256xf32>
    %24 = vector.broadcast %22 : vector<1x256xf32> to vector<4x256xf32>
    %25 = arith.mulf %23, %24 : vector<4x256xf32>
    %26 = arith.addf %20, %25 : vector<4x256xf32>
    %27 = vector.broadcast %1 : vector<4x1xf32> to vector<4x256xf32>
    %28 = arith.addf %26, %27 : vector<4x256xf32>
    %29 = math.tanh %28 : vector<4x256xf32>
    %30 = arith.subf %3, %29 : vector<4x256xf32>
    %c0_6 = arith.constant 0 : index
    %c0_7 = arith.constant 0 : index
    %c0_8 = arith.constant 0 : index
    %31 = vector.load %arg5[%c0_6, %c0_7, %c0_8] : memref<1x4x256xf32, #tpu.memory_space<vmem>>, vector<1x4x256xf32>
    %32 = vector.shape_cast %31 : vector<1x4x256xf32> to vector<4x256xf32>
    %33 = vector.shape_cast %30 : vector<4x256xf32> to vector<1x4x256xf32>
    tpu.vector_store %arg5[%c0_6, %c0_7, %c0_8], %33 {strides = array<i32>} : memref<1x4x256xf32, #tpu.memory_space<vmem>>, vector<1x4x256xf32>,
    return
  }
  func.func @transform_0(%arg0: i32, %arg1: i32) -> (i32, i32, i32) {
    %c0_i32 = arith.constant 0 : i32
    %c0_i32_0 = arith.constant 0 : i32
    return %arg0, %c0_i32, %arg1 : i32, i32, i32
  }
  func.func @transform_1(%arg0: i32, %arg1: i32) -> (i32, i32) {
    %c0_i32 = arith.constant 0 : i32
    %c0_i32_0 = arith.constant 0 : i32
    %c0_i32_1 = arith.constant 0 : i32
    return %c0_i32, %c0_i32_0 : i32, i32
  }
  func.func @transform_2(%arg0: i32, %arg1: i32) -> (i32, i32) {
    %c0_i32 = arith.constant 0 : i32
    %c0_i32_0 = arith.constant 0 : i32
    %c0_i32_1 = arith.constant 0 : i32
    return %c0_i32, %c0_i32_0 : i32, i32
  }
  func.func @transform_3(%arg0: i32, %arg1: i32) -> (i32, i32, i32) {
    %c0_i32 = arith.constant 0 : i32
    %c0_i32_0 = arith.constant 0 : i32
    return %arg0, %c0_i32, %arg1 : i32, i32, i32
  }
}

</mosaic_0001>

<bundles_post_ra>
// kernel: fog_suppression_forward.1
= control target key start
LH: loop header
LB: loop body
LE: loop exit
PB: predicated region body
PF: predicated region fallthrough
CT: control target
= control target key end

     0   :  { %s472_s12 = smov 0   ;;  %s474_s13 = smov 0   ;;  %s518_s0 = inlined_call_operand.vmem [shape: f32[2,4,256], index: 0, kind: input, shape index: {}]   ;;  %s519_s1 = inlined_call_operand.vmem [shape: f32[4,4], index: 1, kind: input, shape index: {}]   ;;  %s520_s2 = inlined_call_operand.vmem [shape: f32[4,1], index: 2, kind: input, shape index: {}]   ;;  %s521_s3 = inlined_call_operand.vmem [shape: f32[2,4,256], index: 3, kind: output, shape index: {}]  }
   0x1   :  { %s476_s14 = smov 0  }
   0x2 LB: > { %s25_s15 = sadd.s32 1, %s442_s13  ;;  %p377_p0 = scmp.ge.s32.totalorder %s446_s14, 1  ;;  %s446_s14 = sphi %s476_s14, %s13_s14   ;;  %s442_s13 = sphi %s474_s13, %s523_s13   ;;  %s438_s12 = sphi %s472_s12, %s522_s12  }
   0x3   : > { %p27_p1 = scmp.ge.s32.totalorder %s25_s15, 2  ;;  %p158_p2 = scmp.lt.s32.totalorder %s446_s14, 3 }
   0x5   : > { %s525_s15 = smov (%p27_p1, %s25_s15), 0  ;;  %p159_p3 = pnand %p377_p0, %p158_p2 }
   0x6   : > { %p191_p4 = scmp.lt.s32.totalorder (!%p159_p3), %s438_s12, 1 }
   0x7   : > { %162 = sbr.rel (%p159_p3) target bundleno = 161 (0xa1), region = 32 }
   0xc   : > { %v210_v0 = vld [vmem:[%s519_s1] sm:$0xf]  ;;  %v448_v1 = vmov 0   ;;  %v449_v2 = vmov 2   ;;  %v450_v4 = vmov 1   ;;  %v451_v5 = vmov 3  }
   0xd   : > { %414 = vset.pattern.permute.xlu0 %v448_v1  ;;  %416 = vset.pattern.permute.xlu1 %v449_v2  ;;  %v211_v3 = vld [vmem:[%s520_s2] sm:$0xf]  ;;  %s527_s12 = smov (!%p191_p4, %s438_s12), 1  ;;  %vm281_vm0 = vcmask 1043456  }
   0xe   : > { %215 = vperm.xlu0 %414, %v210_v0   ;;  %242 = vperm.xlu1 %416, %v210_v0   ;;  %s384_s20 = sshll.u32 %s527_s12, 3 }
   0xf   : > { %418 = vset.pattern.permute.xlu2 %v448_v1  ;;  %s198_s23 = scalar_lea.vmem %s518_s0, %s384_s20  ;;  %s208_s26 = scalar_lea.vmem %s521_s3, %s384_s20 }
  0x10   : > { %271 = vperm.xlu2 %418, %v211_v3   ;;  %v212_v6 = vld [vmem:[%s198_s23] sm:$0xff] }
  0x11   : > { %v219_v9 = vperm.slane %v212_v6, 0  ;;  %v220_v10 = vperm.slane %v212_v6, 4  ;;  %v231_v11 = vperm.slane %v212_v6, 1  ;;  %v232_v12 = vperm.slane %v212_v6, 5 }
  0x12   : > { %v245_v13 = vperm.slane %v212_v6, 2  ;;  %v246_v14 = vperm.slane %v212_v6, 6  ;;  %v259_v15 = vperm.slane %v212_v6, 3  ;;  %v260_v16 = vperm.slane %v212_v6, 7 }
  0x13   : > { %v223_v17 = vperm.slane %v219_v9, 0  ;;  %v224_v18 = vperm.slane %v220_v10, 0  ;;  %v235_v19 = vperm.slane %v231_v11, 1  ;;  %v236_v20 = vperm.slane %v232_v12, 1 }
  0x14   : > { %v249_v21 = vperm.slane %v245_v13, 2  ;;  %v250_v22 = vperm.slane %v246_v14, 2  ;;  %v263_v23 = vperm.slane %v259_v15, 3  ;;  %v264_v24 = vperm.slane %v260_v16, 3 }
  0x16   : > { %415 = vset.pattern.permute.xlu0 %v450_v4  ;;  %417 = vset.pattern.permute.xlu1 %v451_v5 }
  0x17   : > { %228 = vperm.xlu0 %415, %v210_v0   ;;  %256 = vperm.xlu1 %417, %v210_v0  }
  0x1f   : > { %419 = vset.pattern.permute.xlu0 %v448_v1 }
  0x6a   : > { %v272_v39 = vpop.permute.xlu2 %271 }
  0x80   : > { %v216_v7 = vpop.permute.xlu0 %215  ;;  %v243_v8 = vpop.permute.xlu1 %242 }
  0x81   : > { %v225_v27 = vmul.f32 %v223_v17, %v216_v7  ;;  %v226_v28 = vmul.f32 %v224_v18, %v216_v7  ;;  %v251_v31 = vmul.f32 %v249_v21, %v243_v8  ;;  %v252_v32 = vmul.f32 %v250_v22, %v243_v8 }
  0x89   : > { %v229_v25 = vpop.permute.xlu0 %228  ;;  %v257_v26 = vpop.permute.xlu1 %256 }
  0x8a   : > { %v237_v29 = vmul.f32 %v235_v19, %v229_v25  ;;  %v238_v30 = vmul.f32 %v236_v20, %v229_v25  ;;  %v265_v35 = vmul.f32 %v263_v23, %v257_v26  ;;  %v266_v36 = vmul.f32 %v264_v24, %v257_v26 }
  0x8c   : > { %v239_v33 = vadd.f32 %v237_v29, %v225_v27  ;;  %v240_v34 = vadd.f32 %v238_v30, %v226_v28 }
  0x8e   : > { %v253_v37 = vadd.f32 %v251_v31, %v239_v33  ;;  %v254_v38 = vadd.f32 %v252_v32, %v240_v34 }
  0x90   : > { %v267_v40 = vadd.f32 %v265_v35, %v253_v37  ;;  %v268_v41 = vadd.f32 %v266_v36, %v254_v38 }
  0x92   : > { %v275_v42 = vadd.f32 %v272_v39, %v268_v41  ;;  %v274_v43 = vadd.f32 %v272_v39, %v267_v40 }
  0x94   : > { %420 = vtanh.f32 %v275_v42 }
  0x95   : > { %422 = vtanh.f32 %v274_v43 }
  0x9a   : > { %v421_v44 = vpop.eup %420 }
  0x9b   : > { %v280_v45 = vrot.slane %v421_v44, 4  ;;  %v423_v46 = vpop.eup %422 }
  0x9d   : > { %v282_v47 = vsel %vm281_vm0, %v423_v46, %v280_v45 }
  0x9e   : > { %v284_v48 = vsub.f32 %v212_v6, %v282_v47 }
  0xa0   : > { %285 = vst [vmem:[%s208_s26] sm:$0xff] %v284_v48 }
  0xa1 PF: > { %s13_s14 = sadd.s32 1, %s446_s14   ;;  %s522_s12 = smov %s442_s13 }
  0xa2   : > { %p10_p5 = scmp.ge.s32.totalorder %s13_s14, 4   ;;  %s523_s13 = smov %s525_s15 }
  0xa4   :  { %12 = sbr.rel (!%p10_p5) target bundleno = 2 (0x2), region = 62 }

</bundles_post_ra>
